<compile_context>
chip_gen: v7x
topology: tpu7x:2x2x1
jax: 0.10.0
libtpu: 0.0.40
codegen_flags: <defaults>
</compile_context>

<pallas_src>
import math

import jax
import jax.numpy as jnp
import numpy as np
from jax.experimental import pallas as pl
from jax.experimental.pallas import tpu as pltpu

_LOG2 = math.log(2.0)


# ------------------------------ tiling helper ------------------------------- #

def _choose_time_tile(T, max_tile=1024):
    """Largest multiple of 128 that divides T and is <= max_tile; else full T."""
    best = None
    tt = 128
    while tt <= min(T, max_tile):
        if T % tt == 0:
            best = tt
        tt += 128
    return best if best is not None else T


# ------------------------------ Pallas kernels ------------------------------ #

def _make_flow_kernel(num_flows):
    """sum((z*mask)^2) and sum(sum_l log_s_l * mask), per batch element."""

    def kernel(lens_ref, z_ref, *rest):
        logs_refs = rest[:num_flows]
        prior_out = rest[num_flows]
        logs_out = rest[num_flows + 1]
        prior_acc = rest[num_flows + 2]
        logs_acc = rest[num_flows + 3]

        b = pl.program_id(0)
        t = pl.program_id(1)
        tt = z_ref.shape[-1]
        len_b = lens_ref[b]
        t_start = t * tt

        @pl.when(t == 0)
        def _():
            prior_acc[...] = jnp.zeros_like(prior_acc)
            logs_acc[...] = jnp.zeros_like(logs_acc)

        # Skip fully padded time tiles (they contribute exactly zero here).
        @pl.when(t_start < len_b)
        def _():
            lane = jax.lax.broadcasted_iota(jnp.int32, (1, tt), 1)
            m = (lane < (len_b - t_start)).astype(jnp.float32)        # (1, tt)
            zm = z_ref[0].astype(jnp.float32) * m                     # (C, tt)
            prior_acc[...] += zm * zm
            ls = logs_refs[0][0].astype(jnp.float32)
            for r in logs_refs[1:]:
                ls = ls + r[0].astype(jnp.float32)
            logs_acc[...] += ls * m

        @pl.when(t == pl.num_programs(1) - 1)
        def _():
            prior_out[...] = jnp.zeros_like(prior_out) + jnp.sum(prior_acc[...])
            logs_out[...] = jnp.zeros_like(logs_out) + jnp.sum(logs_acc[...])

    return kernel


def _make_regression_kernel(use_bce):
    """Masked MSE / BCE-with-logits sum, per batch element."""

    def kernel(lens_ref, xhat_ref, x_ref, out_ref, acc_ref):
        b = pl.program_id(0)
        t = pl.program_id(1)
        tt = xhat_ref.shape[-1]
        len_b = lens_ref[b]
        t_start = t * tt
        active = t_start < len_b

        @pl.when(t == 0)
        def _():
            acc_ref[...] = jnp.zeros_like(acc_ref)

        @pl.when(active)
        def _():
            lane = jax.lax.broadcasted_iota(jnp.int32, (1, tt), 1)
            m = (lane < (len_b - t_start)).astype(jnp.float32)        # (1, tt)
            xh = xhat_ref[0].astype(jnp.float32) * m                  # (Cr, tt)
            xx = x_ref[0].astype(jnp.float32) * m
            if use_bce:
                # F.binary_cross_entropy_with_logits(..., reduction='sum')
                # applied AFTER masking inputs, as in the PyTorch module.
                per = (jnp.maximum(xh, 0.0) - xh * xx
                       + jnp.log(1.0 + jnp.exp(-jnp.abs(xh))))
                acc_ref[...] += per
            else:
                d = xh - xx
                acc_ref[...] += d * d

        if use_bce:
            @pl.when(jnp.logical_not(active))
            def _():
                # Skipped (fully padded) elements each contribute
                # softplus(0) = log(2), exactly as in PyTorch on masked inputs.
                acc_ref[...] += _LOG2

        @pl.when(t == pl.num_programs(1) - 1)
        def _():
            out_ref[...] = jnp.zeros_like(out_ref) + jnp.sum(acc_ref[...])

    return kernel


# ------------------------------ Pallas wrappers ----------------------------- #

def flow_loss_sums(z, log_s_list, lens_g):
    """z: (B, C, T); log_s_list: list of (B, C, T); lens_g: (B,) int32."""
    B, C, T = z.shape
    L = len(log_s_list)
    assert L >= 1
    tt = _choose_time_tile(T)
    nt = T // tt

    data_spec = pl.BlockSpec((1, C, tt), lambda b, t, lens: (b, 0, t))
    out_spec = pl.BlockSpec((1, 1, 1), lambda b, t, lens: (b, 0, 0))

    prior_p, logs_p = pl.pallas_call(
        _make_flow_kernel(L),
        out_shape=(jax.ShapeDtypeStruct((B, 1, 1), jnp.float32),
                   jax.ShapeDtypeStruct((B, 1, 1), jnp.float32)),
        grid_spec=pltpu.PrefetchScalarGridSpec(
            num_scalar_prefetch=1,
            grid=(B, nt),
            in_specs=[data_spec] * (1 + L),
            out_specs=[out_spec, out_spec],
            scratch_shapes=[pltpu.VMEM((C, tt), jnp.float32),
                            pltpu.VMEM((C, tt), jnp.float32)]),
        compiler_params=pltpu.CompilerParams(
            dimension_semantics=("parallel", "arbitrary")),
    )(lens_g, z, *log_s_list)
    return jnp.sum(prior_p), jnp.sum(logs_p)


def regression_sums(x_hat, x, lens_g, use_bce):
    """x_hat, x: (B, Cr, T); lens_g: (B,) int32. Returns the loss sum."""
    B, Cr, T = x_hat.shape
    tt = _choose_time_tile(T)
    nt = T // tt

    data_spec = pl.BlockSpec((1, Cr, tt), lambda b, t, lens: (b, 0, t))

    loss_p = pl.pallas_call(
        _make_regression_kernel(use_bce),
        out_shape=jax.ShapeDtypeStruct((B, 1, 1), jnp.float32),
        grid_spec=pltpu.PrefetchScalarGridSpec(
            num_scalar_prefetch=1,
            grid=(B, nt),
            in_specs=[data_spec, data_spec],
            out_specs=pl.BlockSpec((1, 1, 1), lambda b, t, lens: (b, 0, 0)),
            scratch_shapes=[pltpu.VMEM((Cr, tt), jnp.float32)]),
        compiler_params=pltpu.CompilerParams(
            dimension_semantics=("parallel", "arbitrary")),
    )(lens_g, x_hat, x)
    return jnp.sum(loss_p)


# -------------------------------- module port ------------------------------- #

class AttributePredictionLossPallas:
    """JAX/Pallas port of NeMo RadTTS AttributePredictionLoss (forward only)."""

    def __init__(self, name, model_config, loss_weight, sigma=1.0):
        self.name = name
        self.sigma = sigma
        self.model_name = model_config['name']
        self.loss_weight = loss_weight
        self.n_group_size = model_config['hparams'].get('n_group_size', 1)

    def forward(self, model_output, lens):
        lens_g = (lens // self.n_group_size).astype(jnp.int32)
        loss_dict = {}
        if 'z' in model_output:
            z = model_output['z']
            _, n_dims, T = z.shape
            log_s_list = model_output['log_s_list']
            # TODO(synk): heterogeneous per-flow log_s shapes (n_group_size>1
            # configs) would need per-flow kernel calls; here all flows share
            # z's (B, C, T) shape.
            for ls in log_s_list:
                assert ls.shape == z.shape

            n_elements = (jnp.sum(lens) // self.n_group_size).astype(jnp.float32)
            prior_sum, log_s_total = flow_loss_sums(z, log_s_list, lens_g)
            prior_NLL = prior_sum / (2.0 * self.sigma * self.sigma)

            log_det_W_list = model_output['log_det_W_list']
            if len(log_det_W_list):
                log_det_W_total = sum(log_det_W_list) * n_elements
            else:
                log_det_W_total = jnp.float32(0.0)

            denom = n_elements * n_dims
            loss = (prior_NLL - log_s_total - log_det_W_total) / denom
            loss_prior = prior_NLL / denom
            loss_dict = {
                'loss_{}'.format(self.name): (loss, self.loss_weight),
                'loss_prior_{}'.format(self.name): (loss_prior, 0.0),
            }
        elif 'x_hat' in model_output:
            x_hat = model_output['x_hat']
            x = model_output['x']
            if x.ndim == 2:
                x = x[:, None, :]
            if x_hat.ndim == 2:
                x_hat = x_hat[:, None, :]
            if x.shape != x_hat.shape:
                x = jnp.broadcast_to(x, x_hat.shape)
            T = x_hat.shape[-1]

            loss_sum = regression_sums(x_hat, x, lens_g,
                                       use_bce=(self.name == 'vpred'))
            # mask.sum() of the un-broadcast (B, 1, T) mask, computed
            # analytically from lens (matches the PyTorch normalization).
            mask_sum = jnp.sum(jnp.minimum(lens_g, T)).astype(jnp.float32)
            loss = loss_sum / mask_sum
            loss_dict = {'loss_{}'.format(self.name): (loss, self.loss_weight)}
        if len(loss_dict) == 0:
            raise Exception('loss not supported')
        return loss_dict


# ----------------------------------- demo ------------------------------------ #

if __name__ == "__main__":
    key = jax.random.PRNGKey(0)
    B, C, T, L = 2, 8, 16, 2
    k1, k2, k3, k4, k5, k6, k7 = jax.random.split(key, 7)
    lens = jnp.array([16, 12], dtype=jnp.int32)

    # ---- flow ('z') path (e.g. RadTTS f0 attribute flow) ----
    z = jax.random.normal(k1, (B, C, T), dtype=jnp.float32)
    log_s_list = [0.1 * jax.random.normal(k2, (B, C, T), dtype=jnp.float32),
                  0.1 * jax.random.normal(k3, (B, C, T), dtype=jnp.float32)]
    log_det_W_list = [jnp.float32(0.05), jnp.float32(-0.02)]
    flow_cfg = {'name': 'agap', 'hparams': {'n_group_size': 1}}
    flow_mod = AttributePredictionLossPallas('f0', flow_cfg, loss_weight=1.0, sigma=1.0)
    flow_out = flow_mod.forward(
        {'z': z, 'log_s_list': log_s_list, 'log_det_W_list': log_det_W_list}, lens)

    # ---- regression ('x_hat') path, BCE-with-logits variant ('vpred') ----
    x_hat = jax.random.normal(k4, (B, 1, T), dtype=jnp.float32)
    x = (jax.random.uniform(k5, (B, T)) > 0.5).astype(jnp.float32)
    reg_cfg = {'name': 'dap', 'hparams': {}}
    bce_mod = AttributePredictionLossPallas('vpred', reg_cfg, loss_weight=1.0)
    bce_out = bce_mod.forward({'x_hat': x_hat, 'x': x}, lens)

    # ---- regression ('x_hat') path, MSE variant (e.g. 'energy') ----
    x_hat2 = jax.random.normal(k6, (B, 1, T), dtype=jnp.float32)
    x2 = jax.random.normal(k7, (B, T), dtype=jnp.float32)
    mse_mod = AttributePredictionLossPallas('energy', reg_cfg, loss_weight=1.0)
    mse_out = mse_mod.forward({'x_hat': x_hat2, 'x': x2}, lens)

    # ---- pure-JAX reference check ----
    mask = (jnp.arange(T)[None, :] < lens[:, None]).astype(jnp.float32)[:, None, :]
    zm = z * mask
    prior = jnp.sum(zm * zm) / 2.0
    ls_total = sum(jnp.sum(ls * mask) for ls in log_s_list)
    n_el = jnp.sum(lens).astype(jnp.float32)
    ldw = (log_det_W_list[0] + log_det_W_list[1]) * n_el
    denom = n_el * C
    ref_flow_loss = (prior - ls_total - ldw) / denom
    ref_flow_prior = prior / denom

    xh_m = x_hat * mask
    x_m = x[:, None, :] * mask
    bce = jnp.sum(jnp.maximum(xh_m, 0.0) - xh_m * x_m
                  + jnp.log(1.0 + jnp.exp(-jnp.abs(xh_m))))
    ref_bce_loss = bce / jnp.sum(mask)

    d = x_hat2 * mask - x2[:, None, :] * mask
    ref_mse_loss = jnp.sum(d * d) / jnp.sum(mask)

    got_flow_loss = jax.block_until_ready(flow_out['loss_f0'][0])
    got_flow_prior = jax.block_until_ready(flow_out['loss_prior_f0'][0])
    got_bce_loss = jax.block_until_ready(bce_out['loss_vpred'][0])
    got_mse_loss = jax.block_until_ready(mse_out['loss_energy'][0])

    assert np.allclose(np.asarray(got_flow_loss), np.asarray(ref_flow_loss),
                       rtol=1e-5, atol=1e-5)
    assert np.allclose(np.asarray(got_flow_prior), np.asarray(ref_flow_prior),
                       rtol=1e-5, atol=1e-5)
    assert np.allclose(np.asarray(got_bce_loss), np.asarray(ref_bce_loss),
                       rtol=1e-5, atol=1e-5)
    assert np.allclose(np.asarray(got_mse_loss), np.asarray(ref_mse_loss),
                       rtol=1e-5, atol=1e-5)

    print("KERNEL_OK")
</pallas_src>

<mosaic_0001>
module attributes {stable_mosaic.version = 11 : i64} {
  func.func @kernel(%arg0: i32, %arg1: i32, %arg2: memref<2xi32, #tpu.memory_space<smem>>, %arg3: memref<1x8x16xf32, #tpu.memory_space<vmem>>, %arg4: memref<1x8x16xf32, #tpu.memory_space<vmem>>, %arg5: memref<1x8x16xf32, #tpu.memory_space<vmem>>, %arg6: memref<1x1x1xf32, #tpu.memory_space<vmem>>, %arg7: memref<1x1x1xf32, #tpu.memory_space<vmem>>, %arg8: memref<8x16xf32, #tpu.memory_space<vmem>>, %arg9: memref<8x16xf32, #tpu.memory_space<vmem>>) attributes {dimension_semantics = [#tpu.dimension_semantics<parallel>, #tpu.dimension_semantics<arbitrary>], iteration_bounds = array<i64: 2, 1>, scalar_prefetch = 1 : i64, scratch_operands = 2 : i64, tpu.core_type = #tpu.core_type<tc>, window_params = [{transform_indices = @transform_0, window_bounds = array<i64: 1, 8, 16>}, {transform_indices = @transform_1, window_bounds = array<i64: 1, 8, 16>}, {transform_indices = @transform_2, window_bounds = array<i64: 1, 8, 16>}, {transform_indices = @transform_3, window_bounds = array<i64: 1, 1, 1>}, {transform_indices = @transform_4, window_bounds = array<i64: 1, 1, 1>}]} {
    %0 = arith.index_cast %arg0 : i32 to index
    %1 = memref.load %arg2[%0] : memref<2xi32, #tpu.memory_space<smem>>
    %c16_i32 = arith.constant 16 : i32
    %2 = arith.muli %arg1, %c16_i32 : i32
    %c0_i32 = arith.constant 0 : i32
    %3 = arith.cmpi eq, %arg1, %c0_i32 : i32
    %4 = arith.extui %3 : i1 to i32
    %c0_i32_0 = arith.constant 0 : i32
    %5 = arith.cmpi ne, %4, %c0_i32_0 : i32
    scf.if %5 {
      %cst = arith.constant 0.000000e+00 : f32
      %12 = vector.broadcast %cst : f32 to vector<8x16xf32>
      %c0 = arith.constant 0 : index
      %c0_4 = arith.constant 0 : index
      %13 = vector.load %arg8[%c0, %c0_4] : memref<8x16xf32, #tpu.memory_space<vmem>>, vector<8x16xf32>
      tpu.vector_store %arg8[%c0, %c0_4], %12 {strides = array<i32>} : memref<8x16xf32, #tpu.memory_space<vmem>>, vector<8x16xf32>,
      %cst_5 = arith.constant 0.000000e+00 : f32
      %14 = vector.broadcast %cst_5 : f32 to vector<8x16xf32>
      %c0_6 = arith.constant 0 : index
      %c0_7 = arith.constant 0 : index
      %15 = vector.load %arg9[%c0_6, %c0_7] : memref<8x16xf32, #tpu.memory_space<vmem>>, vector<8x16xf32>
      tpu.vector_store %arg9[%c0_6, %c0_7], %14 {strides = array<i32>} : memref<8x16xf32, #tpu.memory_space<vmem>>, vector<8x16xf32>,
    } else {
    }
    %6 = arith.cmpi slt, %2, %1 : i32
    %7 = arith.extui %6 : i1 to i32
    %c0_i32_1 = arith.constant 0 : i32
    %8 = arith.cmpi ne, %7, %c0_i32_1 : i32
    scf.if %8 {
      %12 = tpu.iota {dimensions = array<i32: 1>} : vector<1x16xi32>
      %13 = arith.subi %1, %2 : i32
      %14 = vector.broadcast %13 : i32 to vector<1x16xi32>
      %15 = arith.cmpi slt, %12, %14 : vector<1x16xi32>
      %16 = arith.extui %15 : vector<1x16xi1> to vector<1x16xi32>
      %17 = arith.sitofp %16 : vector<1x16xi32> to vector<1x16xf32>
      %c0 = arith.constant 0 : index
      %c0_4 = arith.constant 0 : index
      %c0_5 = arith.constant 0 : index
      %18 = vector.load %arg3[%c0, %c0_4, %c0_5] : memref<1x8x16xf32, #tpu.memory_space<vmem>>, vector<1x8x16xf32>
      %19 = vector.shape_cast %18 : vector<1x8x16xf32> to vector<8x16xf32>
      %20 = vector.broadcast %17 : vector<1x16xf32> to vector<8x16xf32>
      %21 = arith.mulf %19, %20 : vector<8x16xf32>
      %c0_6 = arith.constant 0 : index
      %c0_7 = arith.constant 0 : index
      %22 = vector.load %arg8[%c0_6, %c0_7] : memref<8x16xf32, #tpu.memory_space<vmem>>, vector<8x16xf32>
      %23 = arith.mulf %21, %21 : vector<8x16xf32>
      %24 = arith.addf %22, %23 : vector<8x16xf32>
      %c0_8 = arith.constant 0 : index
      %c0_9 = arith.constant 0 : index
      %25 = vector.load %arg8[%c0_8, %c0_9] : memref<8x16xf32, #tpu.memory_space<vmem>>, vector<8x16xf32>
      tpu.vector_store %arg8[%c0_8, %c0_9], %24 {strides = array<i32>} : memref<8x16xf32, #tpu.memory_space<vmem>>, vector<8x16xf32>,
      %c0_10 = arith.constant 0 : index
      %c0_11 = arith.constant 0 : index
      %c0_12 = arith.constant 0 : index
      %26 = vector.load %arg4[%c0_10, %c0_11, %c0_12] : memref<1x8x16xf32, #tpu.memory_space<vmem>>, vector<1x8x16xf32>
      %27 = vector.shape_cast %26 : vector<1x8x16xf32> to vector<8x16xf32>
      %c0_13 = arith.constant 0 : index
      %c0_14 = arith.constant 0 : index
      %c0_15 = arith.constant 0 : index
      %28 = vector.load %arg5[%c0_13, %c0_14, %c0_15] : memref<1x8x16xf32, #tpu.memory_space<vmem>>, vector<1x8x16xf32>
      %29 = vector.shape_cast %28 : vector<1x8x16xf32> to vector<8x16xf32>
      %30 = arith.addf %27, %29 : vector<8x16xf32>
      %c0_16 = arith.constant 0 : index
      %c0_17 = arith.constant 0 : index
      %31 = vector.load %arg9[%c0_16, %c0_17] : memref<8x16xf32, #tpu.memory_space<vmem>>, vector<8x16xf32>
      %32 = vector.broadcast %17 : vector<1x16xf32> to vector<8x16xf32>
      %33 = arith.mulf %30, %32 : vector<8x16xf32>
      %34 = arith.addf %31, %33 : vector<8x16xf32>
      %c0_18 = arith.constant 0 : index
      %c0_19 = arith.constant 0 : index
      %35 = vector.load %arg9[%c0_18, %c0_19] : memref<8x16xf32, #tpu.memory_space<vmem>>, vector<8x16xf32>
      tpu.vector_store %arg9[%c0_18, %c0_19], %34 {strides = array<i32>} : memref<8x16xf32, #tpu.memory_space<vmem>>, vector<8x16xf32>,
    } else {
    }
    %c0_i32_2 = arith.constant 0 : i32
    %9 = arith.cmpi eq, %arg1, %c0_i32_2 : i32
    %10 = arith.extui %9 : i1 to i32
    %c0_i32_3 = arith.constant 0 : i32
    %11 = arith.cmpi ne, %10, %c0_i32_3 : i32
    scf.if %11 {
      %cst = arith.constant 0.000000e+00 : f32
      %12 = vector.broadcast %cst : f32 to vector<1x1x1xf32>
      %c0 = arith.constant 0 : index
      %c0_4 = arith.constant 0 : index
      %13 = vector.load %arg8[%c0, %c0_4] : memref<8x16xf32, #tpu.memory_space<vmem>>, vector<8x16xf32>
      %14 = vector.shape_cast %13 : vector<8x16xf32> to vector<1x8x16xf32>
      %cst_5 = arith.constant dense<0.000000e+00> : vector<1xf32>
      %15 = vector.multi_reduction <add>, %14, %cst_5 [1, 2] : vector<1x8x16xf32> to vector<1xf32>
      %16 = vector.shape_cast %15 : vector<1xf32> to vector<1x1x1xf32>
      %17 = vector.extract %16[0, 0, 0] : f32 from vector<1x1x1xf32>
      %18 = vector.broadcast %17 : f32 to vector<1x1x1xf32>
      %19 = arith.addf %12, %18 : vector<1x1x1xf32>
      %c0_6 = arith.constant 0 : index
      %c0_7 = arith.constant 0 : index
      %c0_8 = arith.constant 0 : index
      %20 = vector.load %arg6[%c0_6, %c0_7, %c0_8] : memref<1x1x1xf32, #tpu.memory_space<vmem>>, vector<1x1x1xf32>
      tpu.vector_store %arg6[%c0_6, %c0_7, %c0_8], %19 {strides = array<i32>} : memref<1x1x1xf32, #tpu.memory_space<vmem>>, vector<1x1x1xf32>,
      %cst_9 = arith.constant 0.000000e+00 : f32
      %21 = vector.broadcast %cst_9 : f32 to vector<1x1x1xf32>
      %c0_10 = arith.constant 0 : index
      %c0_11 = arith.constant 0 : index
      %22 = vector.load %arg9[%c0_10, %c0_11] : memref<8x16xf32, #tpu.memory_space<vmem>>, vector<8x16xf32>
      %23 = vector.shape_cast %22 : vector<8x16xf32> to vector<1x8x16xf32>
      %cst_12 = arith.constant dense<0.000000e+00> : vector<1xf32>
      %24 = vector.multi_reduction <add>, %23, %cst_12 [1, 2] : vector<1x8x16xf32> to vector<1xf32>
      %25 = vector.shape_cast %24 : vector<1xf32> to vector<1x1x1xf32>
      %26 = vector.extract %25[0, 0, 0] : f32 from vector<1x1x1xf32>
      %27 = vector.broadcast %26 : f32 to vector<1x1x1xf32>
      %28 = arith.addf %21, %27 : vector<1x1x1xf32>
      %c0_13 = arith.constant 0 : index
      %c0_14 = arith.constant 0 : index
      %c0_15 = arith.constant 0 : index
      %29 = vector.load %arg7[%c0_13, %c0_14, %c0_15] : memref<1x1x1xf32, #tpu.memory_space<vmem>>, vector<1x1x1xf32>
      tpu.vector_store %arg7[%c0_13, %c0_14, %c0_15], %28 {strides = array<i32>} : memref<1x1x1xf32, #tpu.memory_space<vmem>>, vector<1x1x1xf32>,
    } else {
    }
    return
  }
  func.func @transform_0(%arg0: i32, %arg1: i32, %arg2: memref<2xi32, #tpu.memory_space<smem>>) -> (i32, i32, i32) {
    %c0_i32 = arith.constant 0 : i32
    %c0_i32_0 = arith.constant 0 : i32
    return %arg0, %c0_i32, %arg1 : i32, i32, i32
  }
  func.func @transform_1(%arg0: i32, %arg1: i32, %arg2: memref<2xi32, #tpu.memory_space<smem>>) -> (i32, i32, i32) {
    %c0_i32 = arith.constant 0 : i32
    %c0_i32_0 = arith.constant 0 : i32
    return %arg0, %c0_i32, %arg1 : i32, i32, i32
  }
  func.func @transform_2(%arg0: i32, %arg1: i32, %arg2: memref<2xi32, #tpu.memory_space<smem>>) -> (i32, i32, i32) {
    %c0_i32 = arith.constant 0 : i32
    %c0_i32_0 = arith.constant 0 : i32
    return %arg0, %c0_i32, %arg1 : i32, i32, i32
  }
  func.func @transform_3(%arg0: i32, %arg1: i32, %arg2: memref<2xi32, #tpu.memory_space<smem>>) -> (i32, i32, i32) {
    %c0_i32 = arith.constant 0 : i32
    %c0_i32_0 = arith.constant 0 : i32
    %c0_i32_1 = arith.constant 0 : i32
    return %arg0, %c0_i32, %c0_i32_0 : i32, i32, i32
  }
  func.func @transform_4(%arg0: i32, %arg1: i32, %arg2: memref<2xi32, #tpu.memory_space<smem>>) -> (i32, i32, i32) {
    %c0_i32 = arith.constant 0 : i32
    %c0_i32_0 = arith.constant 0 : i32
    %c0_i32_1 = arith.constant 0 : i32
    return %arg0, %c0_i32, %c0_i32_0 : i32, i32, i32
  }
}

</mosaic_0001>

<bundles_post_ra>
// kernel: tpu_custom_call.1
= control target key start
LH: loop header
LB: loop body
LE: loop exit
PB: predicated region body
PF: predicated region fallthrough
CT: control target
= control target key end

     0   :  { %s1039_s0 = inlined_call_operand.hbm [shape: s32[2], index: 0, kind: input, shape index: {}]   ;;  %s1040_s1 = inlined_call_operand.hbm [shape: f32[2,8,16], index: 1, kind: input, shape index: {}]   ;;  %s1041_s2 = inlined_call_operand.hbm [shape: f32[2,8,16], index: 2, kind: input, shape index: {}]   ;;  %s1042_s3 = inlined_call_operand.hbm [shape: f32[2,8,16], index: 3, kind: input, shape index: {}]   ;;  %s1043_s4 = inlined_call_operand.vmem [shape: f32[2,1,1], index: 4, kind: output, shape index: {0}]   ;;  %s1044_s5 = inlined_call_operand.vmem [shape: f32[2,1,1], index: 5, kind: output, shape index: {1}]  }
   0x1   :  { %s613_s20 = scalar_lea.hbm %s1039_s0, 16 }
   0x2   :  { %p614_p0 = scmp.ne.s32.totalorder %s1039_s0, %s613_s20  ;;  %p617_p1 = scmp.lt.u32.totalorder %s613_s20, %s1039_s0 }
   0x4   :  { %p619_p2 = pnand %p617_p1, %p614_p0 }
   0x6   :  { %622 = shalt.err (!%p619_p2)  }
   0x7   :  { %s771_s25 = smov [#allocation5]  }
   0x8   :  { %12 = dma.hbm_to_smem %s1039_s0, 16, %s771_s25, [#allocation4] }
   0x9   :  { %737 = dma.done.wait [#allocation4], 16 }
   0xa   :  { %738 = vsyncadd [#allocation4], 4294967280 }
   0xb   :  { %14 = sfence }
   0xc   :  { %15 = vsyncpa [#allocation7], 0 }
   0xd   :  { %17 = vsyncpa [#allocation7 + $0x1], 0 }
   0xe   :  { %18 = vsyncpa [#allocation9], 0 }
   0xf   :  { %20 = vsyncpa [#allocation9 + $0x1], 0  ;;  %s819_s28 = smov 0   ;;  %s821_s29 = smov 0  }
  0x10   :  { %s823_s30 = smov 0   ;;  %s825_s6 = smov 0  }
  0x11   :  { %s827_s7 = smov 0   ;;  %s829_s8 = smov 0  }
  0x12 LB: > { %s1046_s0 = sadd.s32 4294967295, %s769_s8   ;;  %s38_s9 = sadd.s32 1, %s765_s7  ;;  %s769_s8 = sphi %s829_s8, %s26_s8   ;;  %s765_s7 = sphi %s827_s7, %s1063_s7   ;;  %s761_s6 = sphi %s825_s6, %s1062_s6   ;;  %s757_s30 = sphi %s823_s30, %s1061_s30   ;;  %s753_s29 = sphi %s821_s29, %s1060_s29   ;;  %s749_s28 = sphi %s819_s28, %s1059_s28  }
  0x13   : > { %p40_p3 = scmp.ge.s32.totalorder %s38_s9, 2  ;;  %s47_s10 = sadd.s32 1, %s757_s30 }
  0x14   : > { %p54_p4 = scmp.ne.s32.totalorder %s757_s30, %s753_s29  ;;  %p55_p5 = scmp.eq.s32.totalorder %s769_s8, 0 }
  0x15   : > { %s1065_s9 = smov (%p40_p3, %s38_s9), 0  ;;  %p60_p7 = scmp.ne.s32.totalorder %s753_s29, %s749_s28 }
  0x16   : > { %p56_p6 = por %p55_p5, %p54_p4  ;;  %s42_s11 = ssub.s32 %s765_s7, %s1065_s9 }
  0x17   : > { %p61_p8 = scmp.eq.s32.totalorder %s1046_s0, 0  ;;  %p45_p9 = scmp.eq.s32.totalorder %s42_s11, 0 }
  0x18   : > { %p561_p11 = scmp.lt.s32.totalorder %s769_s8, 2  ;;  %s192_s14 = sand.u32 1, %s757_s30  }
  0x19   : > { %p860_p10 = por %p61_p8, %p60_p7  ;;  %s870_s15 = sshll.u32 %s765_s7, 7 }
  0x1a   : > { %s866_s13 = scalar_select %p45_p9, %s757_s30, %s47_s10  }
  0x1b   : > { %s1049_s12 = scalar_select %p860_p10, 1, 0 }
  0x1c   : > { %s874_s16 = sshll.u32 %s192_s14, 3  ;;  %p876_p12 = pnand %p561_p11, %p56_p6 }
  0x1d   : > { %s211_s18 = sand.u32 1, %s769_s8   ;;  %s885_s21 = scalar_lea.hbm %s1041_s2, %s870_s15 }
  0x1e   : > { %s1050_s17 = scalar_select %p876_p12, 1, 0 }
  0x1f   : > { %s215_s22 = scalar_lea.vmem [#allocation8], %s874_s16  ;;  %s891_s24 = scalar_lea.sflag [#allocation9], %s211_s18 }
  0x20   : > { %s223_s23 = sshll.u32 %s215_s22, 4  ;;  %s623_s25 = scalar_lea.hbm %s885_s21, 128  ;;  %s888_s23 = int_to_ptr.vmem [resolvable:$true] %s223_s23 }
  0x21   : > { %p624_p0 = scmp.ne.s32.totalorder %s885_s21, %s623_s25  ;;  %p897_p1 = pneg %p876_p12 }
  0x22   : > { %s628_s10 = scalar_lea.hbm %s1041_s2, 256  ;;  %p629_p4 = scmp.lt.u32.totalorder %s885_s21, %s1041_s2 }
  0x23   : > { %p626_p2 = pnand %p897_p1, %p624_p0  ;;  %p630_p5 = scmp.lt.u32.totalorder %s628_s10, %s623_s25 }
  0x24   : > { %p632_p7 = scmp.lt.u32.totalorder %s623_s25, %s885_s21 }
  0x25   : > { %p627_p3 = pneg %p626_p2  ;;  %p631_p6 = por %p630_p5, %p629_p4 }
  0x27   : > { %p633_p8 = por %p632_p7, %p631_p6 }
  0x29   : > { %p634_p9 = pnand %p633_p8, %p627_p3 }
  0x2b   : > { %637 = shalt.err (!%p634_p9)
}
  0x2c   : > { %s638_s18 = scalar_lea.vmem %s888_s23, 128  ;;  %s772_s20 = smov [#allocation8]  }
  0x2d   : > { %p639_p11 = scmp.ne.s32.totalorder %s888_s23, %s638_s18  ;;  %s643_s22 = sshll.u32 %s772_s20, 4  ;;  %s644_s22 = int_to_ptr.vmem [resolvable:$false] %s643_s22 }
  0x2e   : > { %s645_s27 = scalar_lea.vmem %s644_s22, 256  ;;  %p646_p13 = scmp.lt.s32.totalorder %s888_s23, %s644_s22 }
  0x2f   : > { %p641_p0 = pnand %p639_p11, %p897_p1  ;;  %p647_p10 = scmp.lt.s32.totalorder %s645_s27, %s638_s18 }
  0x31   : > { %p642_p2 = pneg %p641_p0  ;;  %p648_p4 = por %p647_p10, %p646_p13 }
  0x33   : > { %p649_p5 = pnand %p648_p4, %p642_p2 }
  0x35   : > { %652 = shalt.err (!%p649_p5)
}
  0x36   : > { %557 = dma.hbm_to_vmem [thread:$0]  (!%p876_p12), %s885_s21, 128, %s888_s23, %s891_s24  }
  0x37   : > { %p247_p3 = scmp.lt.s32.totalorder %s769_s8, 3  ;;  %p1052_p6 = scmp.ge.s32.totalorder %s769_s8, 1 }
  0x38   : > { %s932_s11 = scalar_lea.hbm %s1040_s1, %s870_s15  ;;  %s196_s19 = scalar_lea.vmem [#allocation6], %s874_s16 }
  0x39   : > { %p924_p7 = pnand %p1052_p6, %p247_p3  ;;  %s204_s18 = sshll.u32 %s196_s19, 4  ;;  %s205_s18 = int_to_ptr.vmem [resolvable:$true] %s204_s18 }
  0x3a   : > { %s193_s21 = scalar_lea.sflag [#allocation7], %s192_s14  ;;  %s653_s23 = scalar_lea.hbm %s932_s11, 128 }
  0x3b   : > { %s1053_s25 = scalar_select %p924_p7, 1, 0 }
  0x3c   : > { %p654_p10 = scmp.ne.s32.totalorder %s932_s11, %s653_s23  ;;  %s658_s27 = scalar_lea.hbm %s1040_s1, 256 }
  0x3d   : > { %p659_p9 = scmp.lt.u32.totalorder %s932_s11, %s1040_s1  ;;  %p660_p11 = scmp.lt.u32.totalorder %s658_s27, %s653_s23 }
  0x3e   : > { %p656_p13 = pnand %p654_p10, %p897_p1  ;;  %p662_p2 = scmp.lt.u32.totalorder %s653_s23, %s932_s11 }
  0x3f   : > { %p661_p0 = por %p660_p11, %p659_p9 }
  0x40   : > { %p657_p8 = pneg %p656_p13 }
  0x41   : > { %p663_p4 = por %p662_p2, %p661_p0 }
  0x43   : > { %p664_p5 = pnand %p663_p4, %p657_p8 }
  0x45   : > { %667 = shalt.err (!%p664_p5)
}
  0x46   : > { %s668_s14 = scalar_lea.vmem %s205_s18, 128  ;;  %s773_s19 = smov [#allocation6]  }
  0x47   : > { %p669_p3 = scmp.ne.s32.totalorder %s205_s18, %s668_s14  ;;  %s673_s0 = sshll.u32 %s773_s19, 4  ;;  %s674_s0 = int_to_ptr.vmem [resolvable:$false] %s673_s0 }
  0x48   : > { %s675_s20 = scalar_lea.vmem %s674_s0, 256  ;;  %p676_p13 = scmp.lt.s32.totalorder %s205_s18, %s674_s0 }
  0x49   : > { %p671_p6 = pnand %p669_p3, %p897_p1  ;;  %p677_p7 = scmp.lt.s32.totalorder %s675_s20, %s668_s14 }
  0x4b   : > { %p672_p10 = pneg %p671_p6  ;;  %p678_p12 = por %p677_p7, %p676_p13 }
  0x4d   : > { %p679_p9 = pnand %p678_p12, %p672_p10 }
  0x4f   : > { %682 = shalt.err (!%p679_p9)
}
  0x50   : > { %p1054_p11 = scmp.ne.s32.totalorder %s1050_s17, 0  ;;  %s958_s27 = scalar_lea.hbm %s1042_s3, %s870_s15 }
  0x51   : > { %s234_s0 = scalar_lea.vmem [#allocation10], %s874_s16  ;;  %s683_s10 = scalar_lea.hbm %s958_s27, 128 }
  0x52   : > { %554 = dma.hbm_to_vmem [thread:$0]  (!%p1054_p11), %s932_s11, 128, %s205_s18, %s193_s21  }
  0x53   : > { %s242_s28 = sshll.u32 %s234_s0, 4  ;;  %p684_p12 = scmp.ne.s32.totalorder %s958_s27, %s683_s10  ;;  %s243_s28 = int_to_ptr.vmem [resolvable:$true] %s242_s28 }
  0x54   : > { %s688_s11 = scalar_lea.hbm %s1042_s3, 256  ;;  %p689_p0 = scmp.lt.u32.totalorder %s958_s27, %s1042_s3 }
  0x55   : > { %p686_p7 = pnand %p684_p12, %p897_p1  ;;  %p690_p2 = scmp.lt.u32.totalorder %s688_s11, %s683_s10 }
  0x56   : > { %p692_p5 = scmp.lt.u32.totalorder %s683_s10, %s958_s27 }
  0x57   : > { %p687_p8 = pneg %p686_p7  ;;  %p691_p4 = por %p690_p2, %p689_p0 }
  0x59   : > { %p693_p3 = por %p692_p5, %p691_p4 }
  0x5b   : > { %p694_p6 = pnand %p693_p3, %p687_p8 }
  0x5d   : > { %697 = shalt.err (!%p694_p6)
}
  0x5e   : > { %s698_s15 = scalar_lea.vmem %s243_s28, 128  ;;  %s774_s16 = smov [#allocation10]  }
  0x5f   : > { %p699_p10 = scmp.ne.s32.totalorder %s243_s28, %s698_s15  ;;  %s703_s20 = sshll.u32 %s774_s16, 4  ;;  %s704_s20 = int_to_ptr.vmem [resolvable:$false] %s703_s20 }
  0x60   : > { %s705_s23 = scalar_lea.vmem %s704_s20, 256  ;;  %p706_p12 = scmp.lt.s32.totalorder %s243_s28, %s704_s20 }
  0x61   : > { %p701_p13 = pnand %p699_p10, %p897_p1  ;;  %p707_p7 = scmp.lt.s32.totalorder %s705_s23, %s698_s15 }
  0x63   : > { %p702_p9 = pneg %p701_p13  ;;  %p708_p11 = por %p707_p7, %p706_p12 }
  0x65   : > { %p709_p0 = pnand %p708_p11, %p702_p9 }
  0x67   : > { %712 = shalt.err (!%p709_p0)
}
  0x68   : > { %p1055_p2 = scmp.ne.s32.totalorder %s1050_s17, 0  ;;  %p1056_p8 = scmp.ne.s32.totalorder %s1053_s25, 0 }
  0x69   : > { %s253_s26 = sand.u32 (!%p1056_p8), 1, %s753_s29   ;;  %p1057_p1 = scmp.ne.s32.totalorder (!%p1056_p8), %s1049_s12, 0 }
  0x6a   : > { %560 = dma.hbm_to_vmem [thread:$0]  (!%p1055_p2), %s958_s27, 128, %s243_s28, %s891_s24  }
  0x6b   : > { %251 = sbr.rel (%p1056_p8) target bundleno = 357 (0x165), region = 32  ;;  %s533_s22 = sshll.u32 (!%p1056_p8), %s253_s26, 3 }
  0x6c   : > { %s254_s0 = scalar_lea.sflag (!%p1056_p8), [#allocation7], %s253_s26  ;;  %s257_s10 = scalar_lea.vmem (!%p1056_p8), [#allocation6], %s533_s22 }
  0x72   : > { %740 = dma.done.wait (%p1057_p1), %s254_s0, 128  }
  0x73   : > { %742 = vsyncadd (%p1057_p1), %s254_s0, 4294967168  ;;  %s1058_s14 = sadd.s32 4294967295, %s769_s8   ;;  %s266_s24 = scalar_lea.vmem [#allocation8], %s533_s22 }
  0x74   : > { %s262_s17 = sand.u32 1, %s1058_s14  }
  0x75   : > { %s263_s19 = scalar_lea.sflag [#allocation9], %s262_s17 }
  0x76   : > { %744 = dma.done.wait (%p1057_p1), %s263_s19, 256  }
  0x77   : > { %746 = vsyncadd (%p1057_p1), %s263_s19, 4294967040  ;;  %p311_p11 = scmp.lt.s32.totalorder %s761_s6, 1  ;;  %vm323_vm0 = vcmask 130048   ;;  %s317_s25 = sld [smem:[#allocation5 + %s761_s6]]  ;;  %v775_v0 = vmov 0.0  }
  0x78   : > { %324 = vst.msk [vmem:[#allocation2] sm:$0xff] %vm323_vm0, %v775_v0  ;;  %325 = vst.msk [vmem:[#allocation3] sm:$0xff] %vm323_vm0, %v775_v0  ;;  %s275_s15 = scalar_lea.vmem [#allocation10], %s533_s22 }
  0x79   : > { %s1067_s6 = smov (!%p311_p11, %s761_s6), 1 }
  0x7a   : > { %s313_s12 = scalar_lea.vmem %s1043_s4, %s1067_s6  ;;  %s316_s21 = scalar_lea.vmem %s1044_s5, %s1067_s6 }
  0x7d   : > { %p537_p4 = scmp.le.s32.totalorder %s317_s25, 0 }
  0x7e   : > { %v330_v1 = vlaneseq (!%p537_p4)  ;;  %v344_v2 = vld [vmem:[%s266_s24] sm:$0xff] (!%p537_p4)  ;;  %v333_v3 = vstv (!%p537_p4), %s317_s25  ;;  %v345_v4 = vld [vmem:[%s275_s15] sm:$0xff] (!%p537_p4)  ;;  %v776_v8 = vmov (!%p537_p4), 0.0  }
  0x7f   : > { %329 = sbr.rel (%p537_p4) target bundleno = 139 (0x8b), region = 52  ;;  %v346_v6 = vadd.f32 (!%p537_p4), %v345_v4, %v344_v2  ;;  %v337_v7 = vld [vmem:[%s257_s10] sm:$0xff] (!%p537_p4)  ;;  %v347_v10 = vld [vmem:[#allocation3] sm:$0xff] (!%p537_p4)  ;;  %v339_v13 = vld [vmem:[#allocation2] sm:$0xff] (!%p537_p4) }
  0x80   : > { %v331_v5 = vand.u32 (!%p537_p4), 127, %v330_v1 }
  0x82   : > { %vm334_vm1 = vcmp.lt.s32.totalorder (!%p537_p4), %v331_v5, %v333_v3 }
  0x83   : > { %v538_v9 = vsel (!%p537_p4), %vm334_vm1, 1.0, %v776_v8 }
  0x84   : > { %v338_v11 = vmul.f32 (!%p537_p4), %v538_v9, %v337_v7  ;;  %v348_v12 = vmul.f32 (!%p537_p4), %v538_v9, %v346_v6 }
  0x86   : > { %v340_v14 = vmul.f32 %v338_v11, %v338_v11  ;;  %v349_v15 = vadd.f32 %v348_v12, %v347_v10 }
  0x88   : > { %v341_v16 = vadd.f32 %v340_v14, %v339_v13  ;;  %350 = vst.msk [vmem:[#allocation3] sm:$0xff] %vm323_vm0, %v349_v15 }
  0x8a   : > { %343 = vst.msk [vmem:[#allocation2] sm:$0xff] %vm323_vm0, %v341_v16 }
  0x8b PF: > { %vm368_vm2 = vcmask 0  }
  0x8f   : > { %v370_v18 = vld [vmem:[#allocation3] sm:$0xff] }
  0x90   : > { %v371_v20 = vsel %vm323_vm0, %v370_v18, 0.0 }
  0x91   : > { %v354_v17 = vld [vmem:[#allocation2] sm:$0xff] }
  0x92   : > { %v356_v19 = vsel %vm323_vm0, %v354_v17, 0.0 }
  0x93   : > { %357 = vadd.xlane.f32.xlu0 %v356_v19 }
  0x97   : > { %372 = vadd.xlane.f32.xlu0 %v371_v20 }
 0x120   : > { %v358_v21 = vpop.xlane.xlu0 %357 }
 0x121   : > { %v359_v22 = vrot.slane %v358_v21, 4 }
 0x123   : > { %v360_v23 = vadd.f32 %v359_v22, %v358_v21 }
 0x124   : > { %v373_v24 = vpop.xlane.xlu0 %372 }
 0x125   : > { %v361_v25 = vrot.slane %v360_v23, 2  ;;  %v374_v26 = vrot.slane %v373_v24, 4 }
 0x127   : > { %v375_v27 = vadd.f32 %v374_v26, %v373_v24  ;;  %v362_v28 = vadd.f32 %v361_v25, %v360_v23 }
 0x129   : > { %v376_v29 = vrot.slane %v375_v27, 2  ;;  %v363_v30 = vrot.slane %v362_v28, 1 }
 0x12b   : > { %v377_v31 = vadd.f32 %v376_v29, %v375_v27  ;;  %v364_v32 = vadd.f32 %v363_v30, %v362_v28 }
 0x12d   : > { %541 = vpush %v364_v32  ;;  %v378_v33 = vrot.slane %v377_v31, 1 }
 0x12f   : > { %v379_v34 = vadd.f32 %v378_v33, %v377_v31 }
 0x131   : > { %543 = vpush %v379_v34 }
 0x15e   : > { %s542_s16 = spop %541 }
 0x15f   : > { %v366_v35 = vstv %s542_s16 }
 0x160   : > { %369 = vst.msk [vmem:[%s313_s12] sm:$0x1] %vm368_vm2, %v366_v35 }
 0x162   : > { %s544_s26 = spop %543 }
 0x163   : > { %v381_v36 = vstv %s544_s26 }
 0x164   : > { %383 = vst.msk [vmem:[%s316_s21] sm:$0x1] %vm368_vm2, %v381_v36 }
 0x165 PF: > { %s26_s8 = sadd.s32 1, %s769_s8   ;;  %s1059_s28 = smov %s753_s29 }
 0x166   : > { %p23_p5 = scmp.ge.s32.totalorder %s26_s8, 4   ;;  %s1060_s29 = smov %s757_s30 }
 0x167   : > { %s1061_s30 = smov %s866_s13  ;;  %s1062_s6 = smov %s765_s7 }
 0x168   : > { %s1063_s7 = smov %s1065_s9  ;;  %25 = sbr.rel (!%p23_p5) target bundleno = 18 (0x12), region = 120 }
 0x16f   :  { %413 = vsyncpa [#allocation7], 1 }
 0x170   :  { %415 = vsyncpa [#allocation7 + $0x1], 1 }
 0x171   :  { %416 = vsyncpa [#allocation9], 1 }
 0x172   :  { %418 = vsyncpa [#allocation9 + $0x1], 1 }

</bundles_post_ra>
